<compile_context>
chip_gen: v7x
topology: tpu7x:2x2x1
jax: 0.10.0
libtpu: 0.0.40
codegen_flags: <defaults>
</compile_context>

<pallas_src>
import functools

import jax
import jax.numpy as jnp
from jax.experimental import pallas as pl
from jax.experimental.pallas import tpu as pltpu

ALPHA = 0.04
GAMMA = 2.0                 # exponent is exactly 2 -> implemented as a square
_LANE = 128
_DEFAULT_MAX_BLOCK_BYTES = 4 * 1024 * 1024   # per-input block; x2 inputs x2 bufs = 16 MiB
_VMEM_LIMIT_BYTES = 32 * 1024 * 1024


def _round_up(v, m):
    return (v + m - 1) // m * m


def _detect_tensorcores():
    """TensorCores addressed by one JAX device (megacore / v7x -> 2, else 1)."""
    try:
        kind = str(jax.devices()[0].device_kind).lower()
    except Exception:
        return 1
    if "v7" in kind or "7x" in kind or "v4" in kind:
        return 2
    if "v5" in kind and "lite" not in kind and "v5e" not in kind:
        return 2  # v5p-style megacore
    return 1


def _pointwise_focal(x, t, binary_targets):
    """Per-element focal loss in f32.  Matches the PyTorch module's forward."""
    x = x.astype(jnp.float32)
    t = t.astype(jnp.float32)

    # pred = inputs.sigmoid()  -- single EUP transcendental via tanh.
    pred = 0.5 * jnp.tanh(0.5 * x) + 0.5

    # F.binary_cross_entropy(inputs, targets, reduction='none')
    # (PyTorch clamps the log terms at -100).
    if binary_targets:
        # Valid only for t in {0,1}: one clamped log instead of two.
        bce = -jnp.maximum(jnp.log(jnp.where(t == 1.0, x, 1.0 - x)), -100.0)
    else:
        log_x = jnp.maximum(jnp.log(x), -100.0)
        log_1mx = jnp.maximum(jnp.log(1.0 - x), -100.0)
        bce = -(log_1mx + t * (log_x - log_1mx))

    # alpha = t*a + (1-t)*(1-a) == (1-a) + t*(2a-1)  (single FMA)
    alpha = (1.0 - ALPHA) + t * (2.0 * ALPHA - 1.0)

    # (1 - pt) = where(t == 1, 1 - pred, pred)
    one_m_pt = jnp.where(t == 1.0, 1.0 - pred, pred)

    return alpha * (one_m_pt * one_m_pt) * bce       # gamma == 2 -> square


def _focal_loss_kernel(x_ref, t_ref, o_ref, acc_ref, *,
                       rows, block_rows, blocks_per_core, binary_targets):
    c = pl.program_id(0)
    i = pl.program_id(1)

    @pl.when(i == 0)
    def _init():
        acc_ref[...] = jnp.zeros_like(acc_ref)

    gb = c * blocks_per_core + i            # unclamped global block id
    base_row = gb * block_rows
    block_is_full = base_row + block_rows <= rows

    # Fast path: every row of this block is valid -> no masking work at all.
    @pl.when(block_is_full)
    def _full():
        f = _pointwise_focal(x_ref[...], t_ref[...], binary_targets)
        acc_ref[...] += jnp.sum(f, axis=0, keepdims=True)

    # Slow path: at most the tail block per core (and the <=1 clamped
    # duplicate block) -> mask invalid rows with the neutral (x=1, t=1) pair,
    # which contributes exactly 0 and is transcendental-safe.
    @pl.when(jnp.logical_not(block_is_full))
    def _tail():
        row_ids = jax.lax.broadcasted_iota(jnp.int32, (block_rows, _LANE), 0)
        valid = (base_row + row_ids) < rows
        x = jnp.where(valid, x_ref[...].astype(jnp.float32), 1.0)
        t = jnp.where(valid, t_ref[...].astype(jnp.float32), 1.0)
        f = _pointwise_focal(x, t, binary_targets)
        acc_ref[...] += jnp.sum(f, axis=0, keepdims=True)

    @pl.when(i == pl.num_programs(1) - 1)
    def _fin():
        o_ref[...] = jnp.sum(acc_ref[...], keepdims=True)   # (1,1) partial sum


def focal_loss(inputs, targets, *, assume_binary_targets=False,
               max_block_bytes=None, ncores=None):
    """Scalar f32 focal loss, matching the PyTorch module's forward semantics.

    `assume_binary_targets=True` enables the single-log fast path (valid only
    when targets are {0,1}, as in the homework's segmentation masks).
    """
    assert inputs.shape == targets.shape
    n = inputs.size
    assert n > 0

    x = jnp.ravel(inputs)
    t = jnp.ravel(targets)

    rows = n // _LANE
    n_main = rows * _LANE

    total = jnp.zeros((), jnp.float32)
    if n_main < n:
        # <=127 trailing elements: tiny plain-jnp reduction in the wrapper
        # instead of a full-tensor pad copy before the kernel.
        total = total + jnp.sum(
            _pointwise_focal(x[n_main:], t[n_main:], assume_binary_targets))

    if rows > 0:
        x2 = (x if n_main == n else x[:n_main]).reshape(rows, _LANE)
        t2 = (t if n_main == n else t[:n_main]).reshape(rows, _LANE)

        # Dtype-aware block size: 4 MiB per input block by default
        # (8192 rows f32 / 16384 rows bf16); inputs double-buffered = 16 MiB.
        itemsize = max(jnp.dtype(x2.dtype).itemsize, jnp.dtype(t2.dtype).itemsize)
        block_bytes = (_DEFAULT_MAX_BLOCK_BYTES if max_block_bytes is None
                       else int(max_block_bytes))
        max_block_rows = max(8, (block_bytes // (_LANE * itemsize)) // 8 * 8)
        block_rows = min(max_block_rows, _round_up(rows, 8))
        num_blocks = pl.cdiv(rows, block_rows)

        nc = _detect_tensorcores() if ncores is None else int(ncores)
        nc = max(1, min(nc, num_blocks))
        blocks_per_core = pl.cdiv(num_blocks, nc)

        def in_map(c, i):
            gb = c * blocks_per_core + i
            # Out-of-range block ids (only when num_blocks % nc != 0) re-read
            # a valid block; their contribution is fully masked in-kernel.
            return (jnp.minimum(gb, num_blocks - 1), 0)

        kernel = functools.partial(
            _focal_loss_kernel,
            rows=rows, block_rows=block_rows, blocks_per_core=blocks_per_core,
            binary_targets=assume_binary_targets)

        partials = pl.pallas_call(
            kernel,
            out_shape=jax.ShapeDtypeStruct((nc, 1), jnp.float32),
            grid_spec=pltpu.PrefetchScalarGridSpec(
                num_scalar_prefetch=0,
                grid=(nc, blocks_per_core),
                in_specs=[
                    pl.BlockSpec((block_rows, _LANE), in_map),
                    pl.BlockSpec((block_rows, _LANE), in_map),
                ],
                out_specs=pl.BlockSpec((1, 1), lambda c, i: (c, 0)),
                scratch_shapes=[pltpu.VMEM((1, _LANE), jnp.float32)],
            ),
            compiler_params=pltpu.CompilerParams(
                dimension_semantics=("parallel", "arbitrary"),
                vmem_limit_bytes=_VMEM_LIMIT_BYTES,
            ),
        )(x2, t2)

        total = total + jnp.sum(partials)

    return total / jnp.float32(n)


def _focal_loss_ref(inputs, targets):
    # Pure-JAX reference mirroring the PyTorch module, for verification.
    x = inputs.astype(jnp.float32)
    t = targets.astype(jnp.float32)
    pred = jax.nn.sigmoid(x)
    log_x = jnp.maximum(jnp.log(x), -100.0)
    log_1mx = jnp.maximum(jnp.log(1.0 - x), -100.0)
    bce = -(t * log_x + (1.0 - t) * log_1mx)
    alpha = t * ALPHA + (1.0 - t) * (1.0 - ALPHA)
    pt = jnp.where(t == 1.0, pred, 1.0 - pred)
    f_loss = alpha * (1.0 - pt) ** GAMMA * bce
    return jnp.mean(f_loss)


if __name__ == "__main__":
    root = jax.random.PRNGKey(0)

    def make_case(key, shape, dtype):
        kx, kt = jax.random.split(key)
        # `inputs` must be probabilities in (0,1) (torch BCE requires it).
        xs = jax.random.uniform(kx, shape, jnp.float32,
                                minval=0.01, maxval=0.99).astype(dtype)
        ts = (jax.random.uniform(kt, shape, jnp.float32) > 0.5).astype(dtype)
        return xs, ts

    k0, k1, k2 = jax.random.split(root, 3)

    # Primary case: NCHW, B=2, C=4, H=16, W=16, f32 (single full block).
    inputs, targets = make_case(k0, (2, 4, 16, 16), jnp.float32)
    loss = focal_loss(inputs, targets)
    jax.block_until_ready(loss)
    ref = _focal_loss_ref(inputs, targets)
    assert jnp.allclose(loss, ref, rtol=1e-5, atol=1e-6), (loss, ref)

    # Binary-target fast path (single clamped log) must match the reference.
    loss_b = focal_loss(inputs, targets, assume_binary_targets=True)
    assert jnp.allclose(loss_b, ref, rtol=1e-5, atol=1e-6), (loss_b, ref)

    # Ragged case (1155 elements): <=127-element lane tail handled by the
    # wrapper, partial row-block masked in-kernel (slow path).
    inputs, targets = make_case(k1, (3, 5, 7, 11), jnp.float32)
    loss = focal_loss(inputs, targets)
    ref = _focal_loss_ref(inputs, targets)
    assert jnp.allclose(loss, ref, rtol=1e-5, atol=1e-6), (loss, ref)

    # bf16 case: default config (single block) and a forced multi-block
    # 2-core grid with an odd block count, exercising both the clamped
    # duplicate block and the partial tail block.
    inputs, targets = make_case(k2, (4, 8, 100, 128), jnp.bfloat16)
    ref = _focal_loss_ref(inputs, targets)
    loss = focal_loss(inputs, targets)
    assert jnp.allclose(loss, ref, rtol=1e-4, atol=1e-6), (loss, ref)
    loss = focal_loss(inputs, targets, assume_binary_targets=True,
                      max_block_bytes=128 * 1024, ncores=2)
    assert jnp.allclose(loss, ref, rtol=1e-4, atol=1e-6), (loss, ref)

    jax.block_until_ready(loss)
    print("KERNEL_OK")
</pallas_src>

<mosaic_0001>
module attributes {stable_mosaic.version = 11 : i64} {
  func.func @_focal_loss_kernel(%arg0: i32, %arg1: i32, %arg2: memref<16x128xf32, #tpu.memory_space<vmem>>, %arg3: memref<16x128xf32, #tpu.memory_space<vmem>>, %arg4: memref<1x1xf32, #tpu.memory_space<vmem>>, %arg5: memref<1x128xf32, #tpu.memory_space<vmem>>) attributes {dimension_semantics = [#tpu.dimension_semantics<parallel>, #tpu.dimension_semantics<arbitrary>], iteration_bounds = array<i64: 1, 1>, scalar_prefetch = 0 : i64, scratch_operands = 1 : i64, tpu.core_type = #tpu.core_type<tc>, window_params = [{transform_indices = @transform_0, window_bounds = array<i64: 16, 128>}, {transform_indices = @transform_1, window_bounds = array<i64: 16, 128>}, {transform_indices = @transform_2, window_bounds = array<i64: 1, 1>}]} {
    %c0_i32 = arith.constant 0 : i32
    %0 = arith.cmpi eq, %arg1, %c0_i32 : i32
    %1 = arith.extui %0 : i1 to i32
    %c0_i32_0 = arith.constant 0 : i32
    %2 = arith.cmpi ne, %1, %c0_i32_0 : i32
    scf.if %2 {
      %cst = arith.constant 0.000000e+00 : f32
      %16 = vector.broadcast %cst : f32 to vector<1x128xf32>
      %c0 = arith.constant 0 : index
      %c0_7 = arith.constant 0 : index
      %17 = vector.load %arg5[%c0, %c0_7] : memref<1x128xf32, #tpu.memory_space<vmem>>, vector<1x128xf32>
      tpu.vector_store %arg5[%c0, %c0_7], %16 {strides = array<i32>} : memref<1x128xf32, #tpu.memory_space<vmem>>, vector<1x128xf32>,
    } else {
    }
    %c1_i32 = arith.constant 1 : i32
    %3 = arith.muli %arg0, %c1_i32 : i32
    %4 = arith.addi %3, %arg1 : i32
    %c16_i32 = arith.constant 16 : i32
    %5 = arith.muli %4, %c16_i32 : i32
    %c16_i32_1 = arith.constant 16 : i32
    %6 = arith.addi %5, %c16_i32_1 : i32
    %c16_i32_2 = arith.constant 16 : i32
    %7 = arith.cmpi sle, %6, %c16_i32_2 : i32
    %8 = arith.extui %7 : i1 to i32
    %c0_i32_3 = arith.constant 0 : i32
    %9 = arith.cmpi ne, %8, %c0_i32_3 : i32
    scf.if %9 {
      %c0 = arith.constant 0 : index
      %c0_7 = arith.constant 0 : index
      %16 = vector.load %arg2[%c0, %c0_7] : memref<16x128xf32, #tpu.memory_space<vmem>>, vector<16x128xf32>
      %c0_8 = arith.constant 0 : index
      %c0_9 = arith.constant 0 : index
      %17 = vector.load %arg3[%c0_8, %c0_9] : memref<16x128xf32, #tpu.memory_space<vmem>>, vector<16x128xf32>
      %cst = arith.constant 5.000000e-01 : f32
      %18 = vector.broadcast %cst : f32 to vector<16x128xf32>
      %19 = arith.mulf %18, %16 : vector<16x128xf32>
      %20 = math.tanh %19 : vector<16x128xf32>
      %cst_10 = arith.constant 5.000000e-01 : f32
      %21 = vector.broadcast %cst_10 : f32 to vector<16x128xf32>
      %22 = arith.mulf %21, %20 : vector<16x128xf32>
      %cst_11 = arith.constant 5.000000e-01 : f32
      %23 = vector.broadcast %cst_11 : f32 to vector<16x128xf32>
      %24 = arith.addf %22, %23 : vector<16x128xf32>
      %25 = math.log %16 : vector<16x128xf32>
      %cst_12 = arith.constant -1.000000e+02 : f32
      %26 = vector.broadcast %cst_12 : f32 to vector<16x128xf32>
      %27 = arith.maximumf %25, %26 : vector<16x128xf32>
      %cst_13 = arith.constant 1.000000e+00 : f32
      %28 = vector.broadcast %cst_13 : f32 to vector<16x128xf32>
      %29 = arith.subf %28, %16 : vector<16x128xf32>
      %30 = math.log %29 : vector<16x128xf32>
      %cst_14 = arith.constant -1.000000e+02 : f32
      %31 = vector.broadcast %cst_14 : f32 to vector<16x128xf32>
      %32 = arith.maximumf %30, %31 : vector<16x128xf32>
      %33 = arith.subf %27, %32 : vector<16x128xf32>
      %34 = arith.mulf %17, %33 : vector<16x128xf32>
      %35 = arith.addf %32, %34 : vector<16x128xf32>
      %cst_15 = arith.constant 0.000000e+00 : f32
      %36 = vector.broadcast %cst_15 : f32 to vector<16x128xf32>
      %37 = arith.subf %36, %35 : vector<16x128xf32>
      %cst_16 = arith.constant -9.200000e-01 : f32
      %38 = vector.broadcast %cst_16 : f32 to vector<16x128xf32>
      %39 = arith.mulf %17, %38 : vector<16x128xf32>
      %cst_17 = arith.constant 0.959999978 : f32
      %40 = vector.broadcast %cst_17 : f32 to vector<16x128xf32>
      %41 = arith.addf %40, %39 : vector<16x128xf32>
      %cst_18 = arith.constant 1.000000e+00 : f32
      %42 = vector.broadcast %cst_18 : f32 to vector<16x128xf32>
      %43 = arith.cmpf oeq, %17, %42 : vector<16x128xf32>
      %cst_19 = arith.constant 1.000000e+00 : f32
      %44 = vector.broadcast %cst_19 : f32 to vector<16x128xf32>
      %45 = arith.subf %44, %24 : vector<16x128xf32>
      %46 = arith.select %43, %45, %24 : vector<16x128xi1>, vector<16x128xf32>
      %47 = arith.mulf %46, %46 : vector<16x128xf32>
      %48 = arith.mulf %41, %47 : vector<16x128xf32>
      %49 = arith.mulf %48, %37 : vector<16x128xf32>
      %c0_20 = arith.constant 0 : index
      %c0_21 = arith.constant 0 : index
      %50 = vector.load %arg5[%c0_20, %c0_21] : memref<1x128xf32, #tpu.memory_space<vmem>>, vector<1x128xf32>
      %cst_22 = arith.constant dense<0.000000e+00> : vector<128xf32>
      %51 = vector.multi_reduction <add>, %49, %cst_22 [0] : vector<16x128xf32> to vector<128xf32>
      %52 = vector.shape_cast %51 : vector<128xf32> to vector<1x128xf32>
      %53 = arith.addf %50, %52 : vector<1x128xf32>
      %c0_23 = arith.constant 0 : index
      %c0_24 = arith.constant 0 : index
      %54 = vector.load %arg5[%c0_23, %c0_24] : memref<1x128xf32, #tpu.memory_space<vmem>>, vector<1x128xf32>
      tpu.vector_store %arg5[%c0_23, %c0_24], %53 {strides = array<i32>} : memref<1x128xf32, #tpu.memory_space<vmem>>, vector<1x128xf32>,
    } else {
    }
    %true = arith.constant true
    %10 = arith.xori %7, %true : i1
    %11 = arith.extui %10 : i1 to i32
    %c0_i32_4 = arith.constant 0 : i32
    %12 = arith.cmpi ne, %11, %c0_i32_4 : i32
    scf.if %12 {
      %16 = tpu.iota {dimensions = array<i32: 0>} : vector<16x128xi32>
      %17 = vector.broadcast %5 : i32 to vector<16x128xi32>
      %18 = arith.addi %17, %16 : vector<16x128xi32>
      %c16_i32_7 = arith.constant 16 : i32
      %19 = vector.broadcast %c16_i32_7 : i32 to vector<16x128xi32>
      %20 = arith.cmpi slt, %18, %19 : vector<16x128xi32>
      %c0 = arith.constant 0 : index
      %c0_8 = arith.constant 0 : index
      %21 = vector.load %arg2[%c0, %c0_8] : memref<16x128xf32, #tpu.memory_space<vmem>>, vector<16x128xf32>
      %cst = arith.constant 1.000000e+00 : f32
      %22 = vector.broadcast %cst : f32 to vector<16x128xf32>
      %23 = arith.select %20, %21, %22 : vector<16x128xi1>, vector<16x128xf32>
      %c0_9 = arith.constant 0 : index
      %c0_10 = arith.constant 0 : index
      %24 = vector.load %arg3[%c0_9, %c0_10] : memref<16x128xf32, #tpu.memory_space<vmem>>, vector<16x128xf32>
      %cst_11 = arith.constant 1.000000e+00 : f32
      %25 = vector.broadcast %cst_11 : f32 to vector<16x128xf32>
      %26 = arith.select %20, %24, %25 : vector<16x128xi1>, vector<16x128xf32>
      %cst_12 = arith.constant 5.000000e-01 : f32
      %27 = vector.broadcast %cst_12 : f32 to vector<16x128xf32>
      %28 = arith.mulf %27, %23 : vector<16x128xf32>
      %29 = math.tanh %28 : vector<16x128xf32>
      %cst_13 = arith.constant 5.000000e-01 : f32
      %30 = vector.broadcast %cst_13 : f32 to vector<16x128xf32>
      %31 = arith.mulf %30, %29 : vector<16x128xf32>
      %cst_14 = arith.constant 5.000000e-01 : f32
      %32 = vector.broadcast %cst_14 : f32 to vector<16x128xf32>
      %33 = arith.addf %31, %32 : vector<16x128xf32>
      %34 = math.log %23 : vector<16x128xf32>
      %cst_15 = arith.constant -1.000000e+02 : f32
      %35 = vector.broadcast %cst_15 : f32 to vector<16x128xf32>
      %36 = arith.maximumf %34, %35 : vector<16x128xf32>
      %cst_16 = arith.constant 1.000000e+00 : f32
      %37 = vector.broadcast %cst_16 : f32 to vector<16x128xf32>
      %38 = arith.subf %37, %23 : vector<16x128xf32>
      %39 = math.log %38 : vector<16x128xf32>
      %cst_17 = arith.constant -1.000000e+02 : f32
      %40 = vector.broadcast %cst_17 : f32 to vector<16x128xf32>
      %41 = arith.maximumf %39, %40 : vector<16x128xf32>
      %42 = arith.subf %36, %41 : vector<16x128xf32>
      %43 = arith.mulf %26, %42 : vector<16x128xf32>
      %44 = arith.addf %41, %43 : vector<16x128xf32>
      %cst_18 = arith.constant 0.000000e+00 : f32
      %45 = vector.broadcast %cst_18 : f32 to vector<16x128xf32>
      %46 = arith.subf %45, %44 : vector<16x128xf32>
      %cst_19 = arith.constant -9.200000e-01 : f32
      %47 = vector.broadcast %cst_19 : f32 to vector<16x128xf32>
      %48 = arith.mulf %26, %47 : vector<16x128xf32>
      %cst_20 = arith.constant 0.959999978 : f32
      %49 = vector.broadcast %cst_20 : f32 to vector<16x128xf32>
      %50 = arith.addf %49, %48 : vector<16x128xf32>
      %cst_21 = arith.constant 1.000000e+00 : f32
      %51 = vector.broadcast %cst_21 : f32 to vector<16x128xf32>
      %52 = arith.cmpf oeq, %26, %51 : vector<16x128xf32>
      %cst_22 = arith.constant 1.000000e+00 : f32
      %53 = vector.broadcast %cst_22 : f32 to vector<16x128xf32>
      %54 = arith.subf %53, %33 : vector<16x128xf32>
      %55 = arith.select %52, %54, %33 : vector<16x128xi1>, vector<16x128xf32>
      %56 = arith.mulf %55, %55 : vector<16x128xf32>
      %57 = arith.mulf %50, %56 : vector<16x128xf32>
      %58 = arith.mulf %57, %46 : vector<16x128xf32>
      %c0_23 = arith.constant 0 : index
      %c0_24 = arith.constant 0 : index
      %59 = vector.load %arg5[%c0_23, %c0_24] : memref<1x128xf32, #tpu.memory_space<vmem>>, vector<1x128xf32>
      %cst_25 = arith.constant dense<0.000000e+00> : vector<128xf32>
      %60 = vector.multi_reduction <add>, %58, %cst_25 [0] : vector<16x128xf32> to vector<128xf32>
      %61 = vector.shape_cast %60 : vector<128xf32> to vector<1x128xf32>
      %62 = arith.addf %59, %61 : vector<1x128xf32>
      %c0_26 = arith.constant 0 : index
      %c0_27 = arith.constant 0 : index
      %63 = vector.load %arg5[%c0_26, %c0_27] : memref<1x128xf32, #tpu.memory_space<vmem>>, vector<1x128xf32>
      tpu.vector_store %arg5[%c0_26, %c0_27], %62 {strides = array<i32>} : memref<1x128xf32, #tpu.memory_space<vmem>>, vector<1x128xf32>,
    } else {
    }
    %c0_i32_5 = arith.constant 0 : i32
    %13 = arith.cmpi eq, %arg1, %c0_i32_5 : i32
    %14 = arith.extui %13 : i1 to i32
    %c0_i32_6 = arith.constant 0 : i32
    %15 = arith.cmpi ne, %14, %c0_i32_6 : i32
    scf.if %15 {
      %c0 = arith.constant 0 : index
      %c0_7 = arith.constant 0 : index
      %16 = vector.load %arg5[%c0, %c0_7] : memref<1x128xf32, #tpu.memory_space<vmem>>, vector<1x128xf32>
      %17 = vector.shape_cast %16 : vector<1x128xf32> to vector<1x1x128xf32>
      %cst = arith.constant dense<0.000000e+00> : vector<1xf32>
      %18 = vector.multi_reduction <add>, %17, %cst [1, 2] : vector<1x1x128xf32> to vector<1xf32>
      %19 = vector.shape_cast %18 : vector<1xf32> to vector<1x1x1xf32>
      %20 = vector.extract %19[0, 0, 0] : f32 from vector<1x1x1xf32>
      %21 = vector.broadcast %20 : f32 to vector<1x1xf32>
      %c0_8 = arith.constant 0 : index
      %c0_9 = arith.constant 0 : index
      %22 = vector.load %arg4[%c0_8, %c0_9] : memref<1x1xf32, #tpu.memory_space<vmem>>, vector<1x1xf32>
      tpu.vector_store %arg4[%c0_8, %c0_9], %21 {strides = array<i32>} : memref<1x1xf32, #tpu.memory_space<vmem>>, vector<1x1xf32>,
    } else {
    }
    return
  }
  func.func @transform_0(%arg0: i32, %arg1: i32) -> (i32, i32) {
    %c1_i32 = arith.constant 1 : i32
    %0 = arith.muli %arg0, %c1_i32 : i32
    %1 = arith.addi %0, %arg1 : i32
    %c0_i32 = arith.constant 0 : i32
    %2 = arith.minsi %1, %c0_i32 : i32
    %c0_i32_0 = arith.constant 0 : i32
    %c0_i32_1 = arith.constant 0 : i32
    return %2, %c0_i32_0 : i32, i32
  }
  func.func @transform_1(%arg0: i32, %arg1: i32) -> (i32, i32) {
    %c1_i32 = arith.constant 1 : i32
    %0 = arith.muli %arg0, %c1_i32 : i32
    %1 = arith.addi %0, %arg1 : i32
    %c0_i32 = arith.constant 0 : i32
    %2 = arith.minsi %1, %c0_i32 : i32
    %c0_i32_0 = arith.constant 0 : i32
    %c0_i32_1 = arith.constant 0 : i32
    return %2, %c0_i32_0 : i32, i32
  }
  func.func @transform_2(%arg0: i32, %arg1: i32) -> (i32, i32) {
    %c0_i32 = arith.constant 0 : i32
    %c0_i32_0 = arith.constant 0 : i32
    return %arg0, %c0_i32 : i32, i32
  }
}

</mosaic_0001>

<bundles_post_ra>
// kernel: tpu_custom_call.1
= control target key start
LH: loop header
LB: loop body
LE: loop exit
PB: predicated region body
PF: predicated region fallthrough
CT: control target
= control target key end

     0   :  { %7 = vsyncpa [#allocation4], 0  ;;  %s395_s0 = inlined_call_operand.hbm [shape: f32[16,128], index: 0, kind: input, shape index: {}]   ;;  %s396_s1 = inlined_call_operand.hbm [shape: f32[16,128], index: 1, kind: input, shape index: {}]   ;;  %s397_s2 = inlined_call_operand.hbm [shape: f32[1,1], index: 2, kind: output, shape index: {}]  }
   0x1   :  { %8 = vsyncpa [#allocation7], 0 }
   0x2   :  { %9 = vsyncpa [#allocation5], 0  ;;  %s338_s9 = smov [#allocation3]   ;;  %s266_s13 = scalar_lea.hbm %s395_s0, 256 }
   0x3   :  { %s21_s10 = sshll.u32 %s338_s9, 4  ;;  %p267_p0 = scmp.ne.s32.totalorder %s395_s0, %s266_s13  ;;  %s22_s10 = int_to_ptr.vmem [resolvable:$true] %s21_s10 }
   0x4   :  { %p270_p1 = scmp.lt.u32.totalorder %s266_s13, %s395_s0 }
   0x6   :  { %p272_p2 = pnand %p270_p1, %p267_p0 }
   0x8   :  { %275 = shalt.err (!%p272_p2)
}
   0x9   :  { %s276_s18 = scalar_lea.vmem %s22_s10, 256  ;;  %p281_p4 = scmp.lt.s32.totalorder %s22_s10, %s22_s10 }
   0xa   :  { %p277_p3 = scmp.ne.s32.totalorder %s22_s10, %s276_s18  ;;  %p282_p5 = scmp.lt.s32.totalorder %s276_s18, %s276_s18 }
   0xc   :  { %p283_p6 = por %p282_p5, %p281_p4 }
   0xe   :  { %p284_p7 = pnand %p283_p6, %p277_p3 }
  0x10   :  { %287 = shalt.err (!%p284_p7)
}
  0x11   :  { %s339_s19 = smov 128   ;;  %s340_s20 = smov 8  }
  0x12   :  { %27 = dma.hbm_to_vmem [thread:$0]  %s395_s0, 256, %s22_s10, [#allocation4], %s339_s19, %s339_s19, %s340_s20  }
  0x13   :  { %s341_s23 = smov [#allocation6]   ;;  %s288_s27 = scalar_lea.hbm %s396_s1, 256 }
  0x14   :  { %s39_s24 = sshll.u32 %s341_s23, 4  ;;  %p289_p8 = scmp.ne.s32.totalorder %s396_s1, %s288_s27  ;;  %s40_s24 = int_to_ptr.vmem [resolvable:$true] %s39_s24 }
  0x15   :  { %p292_p9 = scmp.lt.u32.totalorder %s288_s27, %s396_s1 }
  0x17   :  { %p294_p10 = pnand %p292_p9, %p289_p8 }
  0x19   :  { %297 = shalt.err (!%p294_p10)
}
  0x1a   :  { %s298_s4 = scalar_lea.vmem %s40_s24, 256  ;;  %p303_p12 = scmp.lt.s32.totalorder %s40_s24, %s40_s24 }
  0x1b   :  { %p299_p11 = scmp.ne.s32.totalorder %s40_s24, %s298_s4  ;;  %p304_p13 = scmp.lt.s32.totalorder %s298_s4, %s298_s4 }
  0x1d   :  { %p305_p0 = por %p304_p13, %p303_p12 }
  0x1f   :  { %p306_p1 = pnand %p305_p0, %p299_p11 }
  0x21   :  { %309 = shalt.err (!%p306_p1)
}
  0x22   :  { %45 = dma.hbm_to_vmem [thread:$0]  %s396_s1, 256, %s40_s24, [#allocation7], %s339_s19, %s339_s19, %s340_s20  }
  0x23   :  { %332 = dma.done.wait [#allocation4], 256  }
  0x24   :  { %333 = vsyncadd [#allocation4], 4294967040 }
  0x25   :  { %334 = dma.done.wait [#allocation7], 256  }
  0x26   :  { %335 = vsyncadd [#allocation7], 4294967040  ;;  %v342_v0 = vmov 0.0   ;;  %v72_v1 = vld [vmem:[#allocation3] sm:$0xff]  ;;  %v73_v2 = vld [vmem:[#allocation3 + $0x8] sm:$0xff]  ;;  %vm212_vm2 = vcmask 1040384  }
  0x27   :  { %64 = vst [vmem:[#allocation2] sm:$0x1] %v342_v0  ;;  %v76_v3 = vmul.f32 0.5, %v72_v1  ;;  %v77_v4 = vmul.f32 0.5, %v73_v2  ;;  %254 = vlog2.f32 %v72_v1  ;;  %v90_v5 = vsub.f32 1.0, %v72_v1  ;;  %v74_v9 = vld [vmem:[#allocation6] sm:$0xff] }
  0x28   :  { %256 = vlog2.f32 %v73_v2  ;;  %v91_v6 = vsub.f32 1.0, %v73_v2  ;;  %v75_v12 = vld [vmem:[#allocation6 + $0x8] sm:$0xff]  ;;  %v106_v18 = vmul.f32 -0.92, %v74_v9  ;;  %vm110_vm0 = vcmp.eq.f32.partialorder %v74_v9, 1.0  ;;  %s343_s1 = smov [#allocation8]  }
  0x29   :  { %258 = vtanh.f32 %v76_v3  ;;  %v107_v23 = vmul.f32 -0.92, %v75_v12  ;;  %vm111_vm1 = vcmp.eq.f32.partialorder %v75_v12, 1.0  ;;  %s232_s6 = sshll.u32 %s343_s1, 4  ;;  %vm224_vm3 = vcmask 0   ;;  %s233_s6 = int_to_ptr.vmem [resolvable:$true] %s232_s6 }
  0x2a   :  { %260 = vtanh.f32 %v77_v4  ;;  %v108_v32 = vadd.f32 0.96, %v106_v18  ;;  %s310_s8 = scalar_lea.vmem %s233_s6, 16  ;;  %s314_s9 = scalar_lea.vmem %s233_s6, 32 }
  0x2b   :  { %262 = vlog2.f32 %v90_v5  ;;  %v109_v35 = vadd.f32 0.96, %v107_v23  ;;  %p311_p2 = scmp.ne.s32.totalorder %s233_s6, %s310_s8  ;;  %p315_p3 = scmp.lt.s32.totalorder %s233_s6, %s233_s6 }
  0x2c   :  { %264 = vlog2.f32 %v91_v6  ;;  %p316_p4 = scmp.lt.s32.totalorder %s314_s9, %s310_s8 }
  0x2e   :  { %v122_v55 = vld [vmem:[#allocation2] sm:$0x1]  ;;  %p317_p5 = por %p316_p4, %p315_p3 }
  0x30   :  { %p318_p6 = pnand %p317_p5, %p311_p2 }
  0x31   :  { %v255_v7 = vpop.eup %254 }
  0x32   :  { %v257_v8 = vpop.eup %256  ;;  %v85_v10 = vmul.f32 0.6931472, %v255_v7 }
  0x33   :  { %v259_v11 = vpop.eup %258  ;;  %v87_v13 = vmul.f32 0.6931472, %v257_v8 }
  0x34   :  { %v261_v14 = vpop.eup %260  ;;  %v80_v15 = vmul.f32 0.5, %v259_v11  ;;  %v88_v21 = vmax.f32 %v85_v10, -100.0 }
  0x35   :  { %v263_v16 = vpop.eup %262  ;;  %v81_v17 = vmul.f32 0.5, %v261_v14  ;;  %v89_v25 = vmax.f32 %v87_v13, -100.0 }
  0x36   :  { %v265_v19 = vpop.eup %264  ;;  %v82_v20 = vadd.f32 0.5, %v80_v15  ;;  %v93_v22 = vmul.f32 0.6931472, %v263_v16 }
  0x37   :  { %v83_v24 = vadd.f32 0.5, %v81_v17  ;;  %v95_v26 = vmul.f32 0.6931472, %v265_v19 }
  0x38   :  { %v96_v27 = vmax.f32 %v93_v22, -100.0  ;;  %v112_v28 = vsub.f32 1.0, %v82_v20 }
  0x39   :  { %v97_v29 = vmax.f32 %v95_v26, -100.0  ;;  %v113_v30 = vsub.f32 1.0, %v83_v24 }
  0x3a   :  { %v98_v31 = vsub.f32 %v88_v21, %v96_v27  ;;  %v114_v33 = vsel %vm110_vm0, %v112_v28, %v82_v20 }
  0x3b   :  { %v99_v34 = vsub.f32 %v89_v25, %v97_v29  ;;  %v115_v36 = vsel %vm111_vm1, %v113_v30, %v83_v24  ;;  %v116_v37 = vmul.f32 %v114_v33, %v114_v33 }
  0x3c   :  { %v100_v38 = vmul.f32 %v98_v31, %v74_v9  ;;  %v117_v39 = vmul.f32 %v115_v36, %v115_v36 }
  0x3d   :  { %v101_v40 = vmul.f32 %v99_v34, %v75_v12  ;;  %v118_v42 = vmul.f32 %v116_v37, %v108_v32 }
  0x3e   :  { %v102_v41 = vadd.f32 %v100_v38, %v96_v27  ;;  %v119_v44 = vmul.f32 %v117_v39, %v109_v35 }
  0x3f   :  { %v103_v43 = vadd.f32 %v101_v40, %v97_v29 }
  0x40   :  { %v104_v45 = vsub.f32 0.0, %v102_v41 }
  0x41   :  { %v105_v46 = vsub.f32 0.0, %v103_v43 }
  0x42   :  { %v120_v47 = vmul.f32 %v118_v42, %v104_v45 }
  0x43   :  { %v121_v48 = vmul.f32 %v119_v44, %v105_v46 }
  0x45   :  { %v123_v49 = vadd.f32 %v121_v48, %v120_v47 }
  0x47   :  { %v124_v50 = vrot.slane %v123_v49, 4 }
  0x49   :  { %v125_v51 = vadd.f32 %v124_v50, %v123_v49 }
  0x4b   :  { %v126_v52 = vrot.slane %v125_v51, 2 }
  0x4d   :  { %v127_v53 = vadd.f32 %v126_v52, %v125_v51 }
  0x4f   :  { %v128_v54 = vrot.slane %v127_v53, 1 }
  0x51   :  { %v129_v56 = vadd.f32 %v128_v54, %v127_v53 }
  0x53   :  { %v130_v57 = vadd.f32 %v129_v56, %v122_v55 }
  0x55   :  { %131 = vst [vmem:[#allocation2] sm:$0x1] %v130_v57 }
  0x5c   :  { %v211_v58 = vld [vmem:[#allocation2] sm:$0x1] }
  0x5d   :  { %v213_v59 = vsel %vm212_vm2, %v211_v58, 0.0 }
  0x5e   :  { %214 = vadd.xlane.f32.xlu0 %v213_v59 }
  0xeb   :  { %v215_v60 = vpop.xlane.xlu0 %214 }
  0xec   :  { %v216_v61 = vrot.slane %v215_v60, 4 }
  0xee   :  { %v217_v62 = vadd.f32 %v216_v61, %v215_v60 }
  0xf0   :  { %v218_v63 = vrot.slane %v217_v62, 2 }
  0xf2   :  { %v219_v0 = vadd.f32 %v218_v63, %v217_v62 }
  0xf4   :  { %v220_v1 = vrot.slane %v219_v0, 1 }
  0xf6   :  { %v221_v2 = vadd.f32 %v220_v1, %v219_v0 }
  0xf8   :  { %246 = vpush %v221_v2 }
 0x129   :  { %s247_s7 = spop %246 }
 0x12a   :  { %v223_v3 = vstv %s247_s7 }
 0x12b   :  { %225 = vst.msk [vmem:[#allocation8] sm:$0x1] %vm224_vm3, %v223_v3 }
 0x12c   :  { %321 = shalt.err (!%p318_p6)
}
 0x12d   :  { %s322_s12 = scalar_lea.hbm %s397_s2, 16 }
 0x12e   :  { %p323_p7 = scmp.ne.s32.totalorder %s397_s2, %s322_s12  ;;  %p326_p8 = scmp.lt.u32.totalorder %s322_s12, %s397_s2 }
 0x130   :  { %p328_p9 = pnand %p326_p8, %p323_p7 }
 0x132   :  { %331 = shalt.err (!%p328_p9)
}
 0x133   :  { %235 = dma.vmem_to_hbm [thread:$0]  %s233_s6, 16, %s397_s2, [#allocation5]  }
 0x134   :  { %336 = dma.done.wait [#allocation5], 16  }
 0x135   :  { %337 = vsyncadd [#allocation5], 4294967280 }
 0x136   :  { %239 = vsyncpa [#allocation4], 1 }
 0x137   :  { %240 = vsyncpa [#allocation7], 1 }
 0x138   :  { %241 = vsyncpa [#allocation5], 1 }

</bundles_post_ra>
